<compile_context>
chip_gen: v5e
topology: v5e:2x2
jax: 0.10.0
libtpu: 0.0.40
codegen_flags: <defaults>
</compile_context>

<pallas_src>
import functools

import jax
import jax.numpy as jnp
from jax import lax
from jax.experimental import pallas as pl
from jax.experimental.pallas import tpu as pltpu


def _vq_kernel(x_ref, w_ref, wsq_ref, q_ref, idx_ref):
    x = x_ref[...].astype(jnp.float32)            # (Tn, E)
    w = w_ref[...].astype(jnp.float32)            # (Q, E)
    w_sq = wsq_ref[...].astype(jnp.float32)       # (1, Q)   hoisted ||w||^2
    Tn = x.shape[0]
    Q = w.shape[0]

    # Squared distances: ||x||^2 - 2 x·wᵀ + ||w||^2  -> (Tn, Q).
    x_sq = jnp.sum(x * x, axis=-1, keepdims=True)                       # (Tn, 1)
    xw = lax.dot_general(
        x, w,
        dimension_numbers=(((1,), (1,)), ((), ())),                     # contract E
        preferred_element_type=jnp.float32,
    )                                                                   # (Tn, Q)
    dist = x_sq - 2.0 * xw + w_sq                                       # (Tn, Q)

    # argmin along Q, first-minimal-index tie-break (torch.argmin semantics).
    dmin = jnp.min(dist, axis=-1, keepdims=True)                        # (Tn, 1)
    iota = lax.broadcasted_iota(jnp.int32, (Tn, Q), 1)                  # (Tn, Q)
    idx = jnp.min(jnp.where(dist == dmin, iota, Q), axis=-1)            # (Tn,)

    # Gather codewords via one-hot matmul (TPU-friendly gather).
    onehot = (idx[:, None] == iota).astype(jnp.float32)                 # (Tn, Q)
    q_data = jnp.dot(onehot, w, preferred_element_type=jnp.float32)     # (Tn, E)

    q_ref[...] = q_data.astype(q_ref.dtype)
    # Lane-dense store: idx output block is (1, Tn) with Tn on the lane axis.
    idx_ref[...] = idx[None, :].astype(jnp.int32)


@functools.partial(jax.jit, static_argnames=("tile_n",))
def quantizing_forward(x, weight, *, tile_n=512):
    """x: (N, E); weight: (Q, E) -> (quantized (N, E) f32, idx (N,) int32)."""
    N, E = x.shape
    Q, E2 = weight.shape
    assert E == E2

    # Hoist ||w||^2 out of the kernel (grid-invariant, computed once).
    w_sq = jnp.sum(weight.astype(jnp.float32) ** 2, axis=-1, keepdims=True).T  # (1, Q)

    # Whole batch in one block when it fits; otherwise tile rows (tile_n is a
    # multiple of 8 sublanes and of 128 lanes for the idx output block) and let
    # Pallas handle the ragged last block via the cdiv grid (no jnp.pad copy).
    tn = N if N <= tile_n else tile_n
    grid = (pl.cdiv(N, tn),)
    # TODO(synk): on v7x, when N is large, shrink tn so the grid has >= 2
    # "parallel" steps and both TensorCores get work.

    # Per-step VMEM: double-buffered x/q tiles, idx tile, invariant codebook,
    # and (Tn, Q) f32 temporaries.  2x headroom, capped under v7x's 64 MiB.
    per_step = (2 * tn * E * 4          # x tile (double-buffered)
                + 2 * tn * E * 4        # q tile (double-buffered)
                + 2 * tn * 4            # idx tile
                + Q * E * 4 + Q * 4     # codebook + ||w||^2
                + 4 * tn * Q * 4)       # dist / one-hot / xw temporaries
    vmem_limit = int(min(max(2 * per_step, 32 * 1024 * 1024), 60 * 1024 * 1024))

    q_data, q_idx = pl.pallas_call(
        _vq_kernel,
        out_shape=(
            jax.ShapeDtypeStruct((N, E), jnp.float32),
            jax.ShapeDtypeStruct((1, N), jnp.int32),
        ),
        grid=grid,
        in_specs=[
            pl.BlockSpec((tn, E), lambda i: (i, 0)),    # x row tile
            pl.BlockSpec((Q, E), lambda i: (0, 0)),     # full codebook (invariant)
            pl.BlockSpec((1, Q), lambda i: (0, 0)),     # ||w||^2 (invariant)
        ],
        out_specs=(
            pl.BlockSpec((tn, E), lambda i: (i, 0)),    # quantized rows
            pl.BlockSpec((1, tn), lambda i: (0, i)),    # lane-dense idx slab
        ),
        compiler_params=pltpu.CompilerParams(
            dimension_semantics=("parallel",),
            vmem_limit_bytes=vmem_limit,
        ),
    )(x, weight, w_sq)

    return q_data, q_idx[0]


def _reference(x, weight):
    # Plain-JAX reference mirroring the PyTorch forward exactly.
    delta = weight[None, :, :] - x[:, None, :]
    dist = jnp.sum(delta * delta, axis=-1)
    q_idx = jnp.argmin(dist, axis=-1)
    q_data = weight[q_idx]
    return q_data, q_idx


if __name__ == "__main__":
    # Module config (like Quantizing(num_quantizing=16, quantizing_dim=32)).
    num_quantizing = 16   # Q
    quantizing_dim = 32   # E
    batch = 8             # N (reference forward views idx as input_size[:1],
                          #    which implies a 2-D (N, E) input)

    key = jax.random.PRNGKey(0)
    kw, kx = jax.random.split(key)

    # Deterministic parameter init: nn.init.normal_(weight, mean=0.0, std=1.0).
    # TODO(synk): the dataset-driven weight re-initialization branch in
    # forward() is a stateful training-time side effect using randperm; the
    # codebook is treated as already initialized (equivalent to passing _weight).
    weight = jax.random.normal(kw, (num_quantizing, quantizing_dim),
                               dtype=jnp.float32)
    x = jax.random.normal(kx, (batch, quantizing_dim), dtype=jnp.float32)

    q_data, q_idx = quantizing_forward(x, weight)
    jax.block_until_ready((q_data, q_idx))

    # Sanity check vs. plain-JAX reference of the PyTorch forward.
    ref_data, ref_idx = _reference(x, weight)
    assert q_data.shape == (batch, quantizing_dim)
    assert q_idx.shape == (batch,)
    assert jnp.array_equal(q_idx, ref_idx.astype(jnp.int32))
    assert jnp.allclose(q_data, ref_data, atol=1e-5)

    print("KERNEL_OK")
</pallas_src>

<mosaic_0001>
module attributes {stable_mosaic.version = 11 : i64} {
  func.func @_vq_kernel(%arg0: i32, %arg1: memref<8x32xf32, #tpu.memory_space<vmem>>, %arg2: memref<16x32xf32, #tpu.memory_space<vmem>>, %arg3: memref<1x16xf32, #tpu.memory_space<vmem>>, %arg4: memref<8x32xf32, #tpu.memory_space<vmem>>, %arg5: memref<1x8xi32, #tpu.memory_space<vmem>>) attributes {dimension_semantics = [#tpu.dimension_semantics<parallel>], iteration_bounds = array<i64: 1>, scalar_prefetch = 0 : i64, scratch_operands = 0 : i64, tpu.core_type = #tpu.core_type<tc>, window_params = [{transform_indices = @transform_0, window_bounds = array<i64: 8, 32>}, {pipeline_mode = #tpu.pipeline_mode<synchronous>, transform_indices = @transform_1, window_bounds = array<i64: 16, 32>}, {pipeline_mode = #tpu.pipeline_mode<synchronous>, transform_indices = @transform_2, window_bounds = array<i64: 1, 16>}, {transform_indices = @transform_3, window_bounds = array<i64: 8, 32>}, {transform_indices = @transform_4, window_bounds = array<i64: 1, 8>}]} {
    %c0 = arith.constant 0 : index
    %c0_0 = arith.constant 0 : index
    %0 = vector.load %arg1[%c0, %c0_0] : memref<8x32xf32, #tpu.memory_space<vmem>>, vector<8x32xf32>
    %c0_1 = arith.constant 0 : index
    %c0_2 = arith.constant 0 : index
    %1 = vector.load %arg2[%c0_1, %c0_2] : memref<16x32xf32, #tpu.memory_space<vmem>>, vector<16x32xf32>
    %c0_3 = arith.constant 0 : index
    %c0_4 = arith.constant 0 : index
    %2 = vector.load %arg3[%c0_3, %c0_4] : memref<1x16xf32, #tpu.memory_space<vmem>>, vector<1x16xf32>
    %3 = arith.mulf %0, %0 : vector<8x32xf32>
    %cst = arith.constant dense<0.000000e+00> : vector<8xf32>
    %4 = vector.multi_reduction <add>, %3, %cst [1] : vector<8x32xf32> to vector<8xf32>
    %5 = vector.shape_cast %4 : vector<8xf32> to vector<8x1xf32>
    %cst_5 = arith.constant dense<0.000000e+00> : vector<8x16xf32>
    %6 = tpu.matmul %0, %1, %cst_5 {dimension_numbers = #tpu.dot_dimension_numbers<[1], [1], [0], [0], [0, 0, 1, 0], [], []>} : vector<8x32xf32>, vector<16x32xf32>, vector<8x16xf32> -> vector<8x16xf32>
    %cst_6 = arith.constant 2.000000e+00 : f32
    %7 = vector.broadcast %cst_6 : f32 to vector<8x16xf32>
    %8 = arith.mulf %7, %6 : vector<8x16xf32>
    %9 = vector.broadcast %5 : vector<8x1xf32> to vector<8x16xf32>
    %10 = arith.subf %9, %8 : vector<8x16xf32>
    %11 = vector.broadcast %2 : vector<1x16xf32> to vector<8x16xf32>
    %12 = arith.addf %10, %11 : vector<8x16xf32>
    %cst_7 = arith.constant dense<0x7F800000> : vector<8xf32>
    %13 = vector.multi_reduction <minimumf>, %12, %cst_7 [1] : vector<8x16xf32> to vector<8xf32>
    %14 = vector.shape_cast %13 : vector<8xf32> to vector<8x1xf32>
    %15 = tpu.iota {dimensions = array<i32: 1>} : vector<8x16xi32>
    %16 = vector.broadcast %14 : vector<8x1xf32> to vector<8x16xf32>
    %17 = arith.cmpf oeq, %12, %16 : vector<8x16xf32>
    %c16_i32 = arith.constant 16 : i32
    %18 = vector.broadcast %c16_i32 : i32 to vector<8x16xi32>
    %19 = arith.select %17, %15, %18 : vector<8x16xi1>, vector<8x16xi32>
    %cst_8 = arith.constant dense<2147483647> : vector<8xi32>
    %20 = vector.multi_reduction <minsi>, %19, %cst_8 [1] : vector<8x16xi32> to vector<8xi32>
    %21 = vector.shape_cast %20 : vector<8xi32> to vector<8x1xi32>
    %22 = vector.broadcast %21 : vector<8x1xi32> to vector<8x16xi32>
    %23 = arith.cmpi eq, %22, %15 : vector<8x16xi32>
    %24 = arith.extui %23 : vector<8x16xi1> to vector<8x16xi32>
    %25 = arith.sitofp %24 : vector<8x16xi32> to vector<8x16xf32>
    %cst_9 = arith.constant dense<0.000000e+00> : vector<8x32xf32>
    %26 = tpu.matmul %25, %1, %cst_9 {dimension_numbers = #tpu.dot_dimension_numbers<[1], [0], [0], [1], [0, 0, 1, 1], [], []>} : vector<8x16xf32>, vector<16x32xf32>, vector<8x32xf32> -> vector<8x32xf32>
    %c0_10 = arith.constant 0 : index
    %c0_11 = arith.constant 0 : index
    %27 = vector.load %arg4[%c0_10, %c0_11] : memref<8x32xf32, #tpu.memory_space<vmem>>, vector<8x32xf32>
    tpu.vector_store %arg4[%c0_10, %c0_11], %26 {strides = array<i32>} : memref<8x32xf32, #tpu.memory_space<vmem>>, vector<8x32xf32>,
    %28 = vector.shape_cast %20 : vector<8xi32> to vector<1x8xi32>
    %c0_12 = arith.constant 0 : index
    %c0_13 = arith.constant 0 : index
    %29 = vector.load %arg5[%c0_12, %c0_13] : memref<1x8xi32, #tpu.memory_space<vmem>>, vector<1x8xi32>
    tpu.vector_store %arg5[%c0_12, %c0_13], %28 {strides = array<i32>} : memref<1x8xi32, #tpu.memory_space<vmem>>, vector<1x8xi32>,
    return
  }
  func.func @transform_0(%arg0: i32) -> (i32, i32) {
    %c0_i32 = arith.constant 0 : i32
    %c0_i32_0 = arith.constant 0 : i32
    return %arg0, %c0_i32 : i32, i32
  }
  func.func @transform_1(%arg0: i32) -> (i32, i32) {
    %c0_i32 = arith.constant 0 : i32
    %c0_i32_0 = arith.constant 0 : i32
    %c0_i32_1 = arith.constant 0 : i32
    return %c0_i32, %c0_i32_0 : i32, i32
  }
  func.func @transform_2(%arg0: i32) -> (i32, i32) {
    %c0_i32 = arith.constant 0 : i32
    %c0_i32_0 = arith.constant 0 : i32
    %c0_i32_1 = arith.constant 0 : i32
    return %c0_i32, %c0_i32_0 : i32, i32
  }
  func.func @transform_3(%arg0: i32) -> (i32, i32) {
    %c0_i32 = arith.constant 0 : i32
    %c0_i32_0 = arith.constant 0 : i32
    return %arg0, %c0_i32 : i32, i32
  }
  func.func @transform_4(%arg0: i32) -> (i32, i32) {
    %c0_i32 = arith.constant 0 : i32
    %c0_i32_0 = arith.constant 0 : i32
    return %c0_i32, %arg0 : i32, i32
  }
}

</mosaic_0001>

<bundles_post_ra>
// kernel: quantizing_forward.1
= control target key start
LH: loop header
LB: loop body
LE: loop exit
PB: predicated region body
PF: predicated region fallthrough
CT: control target
= control target key end

     0   :  { %10 = vsyncpa [#allocation3], 0  ;;  %s305_s0 = inlined_call_operand.hbm [shape: f32[8,32], index: 0, kind: input, shape index: {}]   ;;  %s306_s1 = inlined_call_operand.vmem [shape: f32[16,32], index: 1, kind: input, shape index: {}]   ;;  %s307_s2 = inlined_call_operand.vmem [shape: f32[1,16], index: 2, kind: input, shape index: {}]   ;;  %s308_s3 = inlined_call_operand.hbm [shape: f32[8,32], index: 3, kind: output, shape index: {0}]   ;;  %s309_s4 = inlined_call_operand.hbm [shape: s32[1,8], index: 4, kind: output, shape index: {1}]  }
   0x1   :  { %11 = vsyncpa [#allocation4], 0 }
   0x2   :  { %12 = vsyncpa [#allocation7], 0  ;;  %s18_s17 = sshll.u32 %s305_s0, 4  ;;  %s250_s18 = smov [#allocation2]   ;;  %s19_s17 = int_to_ptr.hbm [resolvable:$true] %s18_s17 }
   0x3   :  { %s20_s19 = sshll.u32 %s250_s18, 4  ;;  %s21_s19 = int_to_ptr.vmem [resolvable:$true] %s20_s19 }
   0x4   :  { %23 = dma.hbm_to_vmem [thread:$0]  %s19_s17, 128, %s21_s19, [#allocation3]  }
   0x5   :  { %244 = dma.done.wait [#allocation3], 128  }
   0x6   :  { %245 = vsyncadd [#allocation3], 4294967168  ;;  %vm37_vm0 = vcmask 261120   ;;  %v34_v0 = vld [vmem:[%s306_s1 + $0x8] sm:$0xff]  ;;  %v32_v1 = vld [vmem:[#allocation2] sm:$0xff]  ;;  %vm76_vm1 = vcmask 130048   ;;  %v80_v12 = vlaneseq }
   0x7   :  { %162 = vmatpush.xpose.msk.msra.mxu0 %vm37_vm0, %v34_v0  ;;  %v36_v2 = vmul.f32 %v32_v1, %v32_v1  ;;  %119 = vmatpush.msra.mxu1 %v34_v0  ;;  %v33_v3 = vld [vmem:[%s306_s1] sm:$0xff]  ;;  %vm127_vm4 = vcmask 57344   ;;  %v251_v29 = vmov 0.0   ;;  %s252_s1 = smov [#allocation6]   ;;  %s147_s27 = sshll.u32 %s309_s4, 4  ;;  %s148_s27 = int_to_ptr.hbm [resolvable:$true] %s147_s27 }
   0x8   :  { %v171_v8 = vld [vmem:[%s307_s2] ss:$0 sm:$0xff]  ;;  %v81_v13 = vand.u32 127, %v80_v12  ;;  %s145_s2 = sshll.u32 %s252_s1, 4  ;;  %s253_s28 = smov [#allocation5]   ;;  %s146_s2 = int_to_ptr.vmem [resolvable:$true] %s145_s2 }
   0x9   :  { %v38_v4 = vsel %vm37_vm0, %v36_v2, 0.0  ;;  %120 = vmatpush.msra.mxu1 %v33_v3  ;;  %s134_s29 = sshll.u32 %s253_s28, 4  ;;  %s136_s6 = sshll.u32 %s308_s3, 4  ;;  %s135_s29 = int_to_ptr.vmem [resolvable:$true] %s134_s29  ;;  %s137_s6 = int_to_ptr.hbm [resolvable:$true] %s136_s6 }
   0xa   :  { %39 = vadd.xlane.f32.xlu0 %v38_v4 }
   0xb   :  { %163 = vmatpush.xpose.msk.msra.mxu0 %vm37_vm0, %v33_v3 }
   0xe   :  { %164 = vmatmul.msk.f32.vlgmr.msra.gmra.mxu0 %vm37_vm0, %v32_v1 }
  0x7d   :  { %v40_v6 = vpop.xlane.xlu0 %39 }
  0x8b   :  { %v67_v5 = vpop.f32.mrf.mxu0 }
  0x8c   :  { %v70_v7 = vmul.f32 2.0, %v67_v5 }
  0x8e   :  { %v71_v9 = vsub.f32 %v40_v6, %v70_v7 }
  0x90   :  { %v75_v10 = vadd.f32 %v171_v8, %v71_v9 }
  0x92   :  { %v77_v11 = vsel %vm76_vm1, %v75_v10, inf }
  0x93   :  { %78 = vmin.xlane.f32.xlu0 %v77_v11 }
 0x106   :  { %v79_v14 = vpop.xlane.xlu0 %78 }
 0x107   :  { %vm82_vm2 = vcmp.eq.f32.partialorder %v75_v10, %v79_v14 }
 0x108   :  { %v83_v15 = vsel %vm82_vm2, %v81_v13, 16 }
 0x109   :  { %v84_v16 = vsel %vm76_vm1, %v83_v15, 2147483647 }
 0x10a   :  { %v86_v17 = vshra.s32 %v84_v16, 16  ;;  %v85_v19 = vand.u32 65535, %v84_v16 }
 0x10c   :  { %v88_v18 = vcvt.s32.f32 %v86_v17  ;;  %v87_v21 = vcvt.s32.f32 %v85_v19 }
 0x10e   :  { %89 = vmin.xlane.f32.xlu1 %v88_v18 }
 0x181   :  { %v90_v20 = vpop.xlane.xlu1 %89 }
 0x182   :  { %vm91_vm3 = vcmp.eq.f32.partialorder %v88_v18, %v90_v20  ;;  %v96_v23 = vcvt.f32.s32 %v90_v20 }
 0x183   :  { %v92_v22 = vsel %vm91_vm3, %v87_v21, inf }
 0x184   :  { %93 = vmin.xlane.f32.xlu1 %v92_v22  ;;  %v97_v25 = vshll.u32 %v96_v23, 16 }
 0x1f7   :  { %v94_v24 = vpop.xlane.xlu1 %93 }
 0x1f8   :  { %v95_v26 = vcvt.f32.s32 %v94_v24 }
 0x1fa   :  { %v98_v27 = vadd.s32 %v97_v25, %v95_v26 }
 0x1fc   :  { %v126_v28 = vperm.slane %v98_v27, %v81_v13  ;;  %vm99_vm5 = vcmp.eq.s32.totalorder %v98_v27, %v81_v13 }
 0x1fd   :  { %v165_v30 = vsel %vm99_vm5, 1.0, %v251_v29 }
 0x1fe   :  { %166 = vmatmul.msk.f32.vlgmr.msra.gmra.mxu1 %vm76_vm1, %v165_v30  ;;  %128 = vst.msk [vmem:[#allocation6] sm:$0x1] %vm127_vm4, %v126_v28 }
 0x1ff   :  { %150 = dma.vmem_to_hbm [thread:$0]  %s146_s2, 16, %s148_s27, [#allocation7]  }
 0x27b   :  { %v122_v31 = vpop.f32.mrf.mxu1 }
 0x27c   :  { %125 = vst.msk [vmem:[#allocation5] sm:$0xff] %vm37_vm0, %v122_v31 }
 0x27d   :  { %139 = dma.vmem_to_hbm [thread:$0]  %s135_s29, 128, %s137_s6, [#allocation4]  }
 0x27e   :  { %246 = dma.done.wait [#allocation4], 128  }
 0x27f   :  { %247 = vsyncadd [#allocation4], 4294967168 }
 0x280   :  { %248 = dma.done.wait [#allocation7], 16  }
 0x281   :  { %249 = vsyncadd [#allocation7], 4294967280 }
 0x282   :  { %159 = vsyncpa [#allocation3], 1 }
 0x283   :  { %160 = vsyncpa [#allocation4], 1 }
 0x284   :  { %161 = vsyncpa [#allocation7], 1 }

</bundles_post_ra>
